<compile_context>
chip_gen: v5e
topology: v5e:2x2
jax: 0.10.0
libtpu: 0.0.40
codegen_flags: <defaults>
</compile_context>

<pallas_src>
import jax
import jax.numpy as jnp
from jax.experimental import pallas as pl
from jax.experimental.pallas import tpu as pltpu

_PREFERRED_LANE = 512              # multiple of 128 -> unmasked full-lane stores
_TARGET_BLOCK_ELEMS = 2048 * 512   # ~4 MiB f32 per block: amortizes per-step overhead
_VMEM_LIMIT = 32 * 1024 * 1024     # safe on every generation (v7x total VMEM = 64 MiB)


def _exp_rbf_kernel(x_ref, o_ref):
    # Compute in f32 (v5e VPU/EUP have no native bf16 path); exp goes to the EUP.
    x = x_ref[...].astype(jnp.float32)
    o_ref[...] = jnp.exp(-(x * x)).astype(o_ref.dtype)


def _pick_lane(n):
    """Largest lane width (multiple of 128) that divides n exactly, else None."""
    for lane in (512, 384, 256, 128):
        if n % lane == 0:
            return lane
    return None


def _build_call(rows, lane, block_rows, in_dtype, out_dtype, n_elems,
                dim_semantics, buffer_count):
    grid = (pl.cdiv(rows, block_rows),)
    if buffer_count is None:
        in_spec = pl.BlockSpec((block_rows, lane), lambda i: (i, 0))
    else:
        in_spec = pl.BlockSpec((block_rows, lane), lambda i: (i, 0),
                               pipeline_mode=pl.Buffered(buffer_count))
    out_spec = pl.BlockSpec((block_rows, lane), lambda i: (i, 0))
    bytes_accessed = n_elems * (jnp.dtype(in_dtype).itemsize
                                + jnp.dtype(out_dtype).itemsize)
    cost = pl.CostEstimate(flops=2 * n_elems, transcendentals=n_elems,
                           bytes_accessed=bytes_accessed)
    return pl.pallas_call(
        _exp_rbf_kernel,
        out_shape=jax.ShapeDtypeStruct((rows, lane), out_dtype),
        grid=grid,
        in_specs=[in_spec],
        out_specs=out_spec,
        cost_estimate=cost,
        compiler_params=pltpu.CompilerParams(
            dimension_semantics=dim_semantics,
            vmem_limit_bytes=_VMEM_LIMIT,
        ),
    )


def exp_rbf(x: jax.Array) -> jax.Array:
    """Elementwise exp(-x**2) via a tiled, pipelined Pallas TPU kernel."""
    orig_shape = x.shape
    out_dtype = x.dtype if jnp.issubdtype(x.dtype, jnp.floating) else jnp.float32
    n = x.size
    if n == 0:
        return jnp.zeros(orig_shape, out_dtype)

    lane = _pick_lane(n)
    if lane is not None:
        # Zero-copy path: total size divides a 128-multiple lane width, so the
        # lane-dense 2D slab is a free reshape (no pad, no trailing slice).
        rows = n // lane
        x2d = x.reshape(rows, lane)
        padded_n = n
    else:
        # Ragged fallback: pad + slice. Negligible for small inputs.
        # TODO(synk): for large ragged arrays, process the <lane tail in a
        # separate tiny call aliased into the output to avoid the pad/slice
        # HBM copies.
        lane = _PREFERRED_LANE
        flat = x.reshape(-1)
        padded_n = pl.cdiv(n, lane) * lane
        flat = jnp.pad(flat, (0, padded_n - n))
        rows = padded_n // lane
        x2d = flat.reshape(rows, lane)

    # Block rows: ~4 MiB blocks, multiple of 8, or the full row extent for small
    # inputs (a full-extent block dim is always legal). Edge partial row-blocks
    # are masked by Pallas, which is safe for a pure elementwise op.
    target_rows = max(8, (_TARGET_BLOCK_ELEMS // lane) // 8 * 8)
    block_rows = rows if rows <= target_rows else target_rows
    n_blocks = pl.cdiv(rows, block_rows)

    out2d = None
    device_kind = jax.devices()[0].device_kind.lower()
    if "v7" in device_kind and n_blocks >= 2 and hasattr(pltpu, "CORE_PARALLEL"):
        # v7x: shard the row grid across both TensorCores and deepen input
        # buffering so the now-short steps keep the DMAs covered.
        try:
            call = _build_call(rows, lane, block_rows, x2d.dtype, out_dtype, n,
                               (pltpu.CORE_PARALLEL,), 3)
            out2d = jax.block_until_ready(call(x2d))
        except Exception:
            out2d = None  # fall back to the portable configuration below
    if out2d is None:
        call = _build_call(rows, lane, block_rows, x2d.dtype, out_dtype, n,
                           ("parallel",), None)
        out2d = call(x2d)

    out = out2d.reshape(-1)
    if padded_n != n:
        out = out[:n]
    return out.reshape(orig_shape)


if __name__ == "__main__":
    key = jax.random.PRNGKey(0)

    # Small NCHW input consistent with a conv-style pipeline: batch=2, C=4, 16x16.
    # n = 2048 -> zero-copy path, lane=512.
    x = jax.random.normal(key, (2, 4, 16, 16), dtype=jnp.float32)
    y = jax.block_until_ready(exp_rbf(x))
    ref = jnp.exp(-(x ** 2))
    assert y.shape == x.shape and y.dtype == x.dtype
    assert jnp.allclose(y, ref, atol=1e-6, rtol=1e-5), "mismatch vs reference"

    # Element count NOT a multiple of 128 -> exercises the pad/slice fallback.
    x2 = jax.random.normal(jax.random.PRNGKey(0), (2, 3, 7, 7), dtype=jnp.float32)
    y2 = jax.block_until_ready(exp_rbf(x2))
    ref2 = jnp.exp(-(x2 ** 2))
    assert y2.shape == x2.shape and y2.dtype == x2.dtype
    assert jnp.allclose(y2, ref2, atol=1e-6, rtol=1e-5), "mismatch (padded path)"

    # Element count divisible by 128 but not 512 -> exercises the narrow-lane
    # zero-copy path (lane=128).
    x3 = jax.random.normal(jax.random.PRNGKey(0), (2, 5, 64), dtype=jnp.float32)
    y3 = jax.block_until_ready(exp_rbf(x3))
    ref3 = jnp.exp(-(x3 ** 2))
    assert y3.shape == x3.shape and y3.dtype == x3.dtype
    assert jnp.allclose(y3, ref3, atol=1e-6, rtol=1e-5), "mismatch (lane=128 path)"

    print("KERNEL_OK")
</pallas_src>

<mosaic_0001>
module attributes {stable_mosaic.version = 11 : i64} {
  func.func @_exp_rbf_kernel(%arg0: i32, %arg1: memref<4x512xf32, #tpu.memory_space<vmem>>, %arg2: memref<4x512xf32, #tpu.memory_space<vmem>>) attributes {dimension_semantics = [#tpu.dimension_semantics<parallel>], iteration_bounds = array<i64: 1>, scalar_prefetch = 0 : i64, scratch_operands = 0 : i64, tpu.core_type = #tpu.core_type<tc>, window_params = [{transform_indices = @transform_0, window_bounds = array<i64: 4, 512>}, {transform_indices = @transform_1, window_bounds = array<i64: 4, 512>}]} {
    %c0 = arith.constant 0 : index
    %c0_0 = arith.constant 0 : index
    %0 = vector.load %arg1[%c0, %c0_0] : memref<4x512xf32, #tpu.memory_space<vmem>>, vector<4x512xf32>
    %1 = arith.mulf %0, %0 : vector<4x512xf32>
    %cst = arith.constant 0.000000e+00 : f32
    %2 = vector.broadcast %cst : f32 to vector<4x512xf32>
    %3 = arith.subf %2, %1 : vector<4x512xf32>
    %4 = math.exp %3 : vector<4x512xf32>
    %c0_1 = arith.constant 0 : index
    %c0_2 = arith.constant 0 : index
    %5 = vector.load %arg2[%c0_1, %c0_2] : memref<4x512xf32, #tpu.memory_space<vmem>>, vector<4x512xf32>
    tpu.vector_store %arg2[%c0_1, %c0_2], %4 {strides = array<i32>} : memref<4x512xf32, #tpu.memory_space<vmem>>, vector<4x512xf32>,
    return
  }
  func.func @transform_0(%arg0: i32) -> (i32, i32) {
    %c0_i32 = arith.constant 0 : i32
    %c0_i32_0 = arith.constant 0 : i32
    return %arg0, %c0_i32 : i32, i32
  }
  func.func @transform_1(%arg0: i32) -> (i32, i32) {
    %c0_i32 = arith.constant 0 : i32
    %c0_i32_0 = arith.constant 0 : i32
    return %arg0, %c0_i32 : i32, i32
  }
}

</mosaic_0001>

<bundles_post_ra>
// kernel: tpu_custom_call.1
= control target key start
LH: loop header
LB: loop body
LE: loop exit
PB: predicated region body
PF: predicated region fallthrough
CT: control target
= control target key end

     0   :  { %6 = vsyncpa [#allocation3], 0  ;;  %s128_s0 = inlined_call_operand.hbm [shape: f32[4,512], index: 0, kind: input, shape index: {}]   ;;  %s129_s1 = inlined_call_operand.hbm [shape: f32[4,512], index: 1, kind: output, shape index: {}]  }
   0x1   :  { %7 = vsyncpa [#allocation4], 0  ;;  %s13_s8 = sshll.u32 %s128_s0, 4  ;;  %s110_s9 = smov [#allocation2]   ;;  %s14_s8 = int_to_ptr.hbm [resolvable:$true] %s13_s8 }
   0x2   :  { %s15_s10 = sshll.u32 %s110_s9, 4  ;;  %s16_s10 = int_to_ptr.vmem [resolvable:$true] %s15_s10 }
   0x3   :  { %18 = dma.hbm_to_vmem [thread:$0]  %s14_s8, 256, %s16_s10, [#allocation3]  }
   0x4   :  { %106 = dma.done.wait [#allocation3], 256  }
   0x5   :  { %107 = vsyncadd [#allocation3], 4294967040  ;;  %v23_v0 = vld [vmem:[#allocation2] sm:$0xff]  ;;  %v24_v1 = vld [vmem:[#allocation2 + $0x8] sm:$0xff]  ;;  %s111_s11 = smov [#allocation5]   ;;  %s42_s14 = sshll.u32 %s129_s1, 4  ;;  %s43_s14 = int_to_ptr.hbm [resolvable:$true] %s42_s14 }
   0x6   :  { %v25_v2 = vmul.f32 %v23_v0, %v23_v0  ;;  %v26_v3 = vmul.f32 %v24_v1, %v24_v1  ;;  %s40_s12 = sshll.u32 %s111_s11, 4  ;;  %s41_s12 = int_to_ptr.vmem [resolvable:$true] %s40_s12 }
   0x8   :  { %v27_v4 = vsub.f32 0.0, %v25_v2  ;;  %v28_v5 = vsub.f32 0.0, %v26_v3 }
   0xa   :  { %v29_v6 = vmul.f32 1.442695, %v27_v4  ;;  %v31_v7 = vmul.f32 1.442695, %v28_v5 }
   0xc   :  { %54 = vpow2.f32 %v29_v6 }
   0xd   :  { %56 = vpow2.f32 %v31_v7 }
  0x12   :  { %v55_v8 = vpop.eup %54 }
  0x13   :  { %v57_v9 = vpop.eup %56  ;;  %33 = vst [vmem:[#allocation5] sm:$0xff] %v55_v8 }
  0x14   :  { %34 = vst [vmem:[#allocation5 + $0x8] sm:$0xff] %v57_v9 }
  0x15   :  { %45 = dma.vmem_to_hbm [thread:$0]  %s41_s12, 256, %s43_s14, [#allocation4]  }
  0x16   :  { %108 = dma.done.wait [#allocation4], 256  }
  0x17   :  { %109 = vsyncadd [#allocation4], 4294967040 }
  0x18   :  { %50 = vsyncpa [#allocation3], 1 }
  0x19   :  { %51 = vsyncpa [#allocation4], 1 }

</bundles_post_ra>
